<compile_context>
chip_gen: v5e
topology: v5e:2x2
jax: 0.10.0
libtpu: 0.0.40
codegen_flags: <defaults>
</compile_context>

<pallas_src>
import functools

import jax
import jax.numpy as jnp
from jax.experimental import pallas as pl
from jax.experimental.pallas import tpu as pltpu


_LANE = 128


def _round_up(x, m):
    return ((x + m - 1) // m) * m


def _const_spec(block_shape, index_map, nbytes):
    """BlockSpec for a grid-invariant operand (index_map is constant).

    For large operands, request single-buffering so the auto-pipeline does not
    allocate 2x VMEM for data that never changes (matters most on v7x's 64 MiB
    VMEM).  Falls back to a plain BlockSpec on jax versions without
    pipeline_mode / Buffered.
    """
    if nbytes >= (4 << 20):
        try:
            return pl.BlockSpec(block_shape, index_map,
                                pipeline_mode=pl.Buffered(1))
        except Exception:  # pragma: no cover - older jax
            pass
    return pl.BlockSpec(block_shape, index_map)


def _rbf_from_z(z, c, M, N_pad, scale):
    """z: (TB, M*N_pad) f32, c: (1, M*N_pad) f32  ->  conf, log_conf (TB, N_pad)."""
    d = z - c
    d2 = d * d
    # Sum over the M centroid groups with lane-aligned static slices
    # (N_pad is a multiple of 128 -> pure vreg selection + VPU adds, no XLU).
    acc = d2[:, :N_pad]
    for m in range(1, M):
        acc = acc + d2[:, m * N_pad:(m + 1) * N_pad]
    s = acc * scale                    # mean over M and /(2*ls^2) folded into one scale
    conf = jnp.exp(-s)                 # EUP
    log_conf = jnp.log(conf)           # log(exp(.)) matches PyTorch exactly (incl. -inf)
    return conf, log_conf


def _duq_kernel(x_ref, w_ref, c_ref, conf_ref, logc_ref, *, M, N_pad, scale):
    # Full-D resident-weight path: one lane-dense MXU matmul per batch tile.
    z = jnp.dot(x_ref[...], w_ref[...], preferred_element_type=jnp.float32)
    conf, log_conf = _rbf_from_z(z, c_ref[...], M, N_pad, scale)
    conf_ref[...] = conf
    logc_ref[...] = log_conf


def _duq_kernel_ktiled(x_ref, w_ref, c_ref, conf_ref, logc_ref, z_acc,
                       *, M, N_pad, scale):
    # K-tiled path: accumulate z over feature_dim chunks in an f32 scratch.
    k = pl.program_id(1)

    @pl.when(k == 0)
    def _():
        z_acc[...] = jnp.zeros_like(z_acc)

    z_acc[...] += jnp.dot(x_ref[...], w_ref[...],
                          preferred_element_type=jnp.float32)

    @pl.when(k == pl.num_programs(1) - 1)
    def _():
        conf, log_conf = _rbf_from_z(z_acc[...], c_ref[...], M, N_pad, scale)
        conf_ref[...] = conf
        logc_ref[...] = log_conf


def prepare_duq_params(weight, centroids_sum, centroids_num, *, matmul_dtype=None):
    """One-time layout plumbing.  Hoist out of the train/eval step and cache:
    the transpose/pad/cast re-reads the full weight from HBM on every call
    otherwise.

    weight:        (centroid_dim M, num_classes N, feature_dim D)
    centroids_sum: (M, N)
    centroids_num: (N,)
    Returns (w_flat (D, M*N_pad), c_flat (1, M*N_pad), dims=(M, N, N_pad, D)).
    """
    M, N, D = weight.shape
    N_pad = _round_up(N, _LANE)
    # Lane-pad classes with zero columns; column m*N_pad + n holds weight[m, n, :].
    # Pad columns contribute exactly 0 to the per-group squared distance.
    w_pad = jnp.pad(weight.astype(jnp.float32), ((0, 0), (0, N_pad - N), (0, 0)))
    w_flat = jnp.transpose(w_pad, (2, 0, 1)).reshape(D, M * N_pad)
    if matmul_dtype is not None:
        # Cast in the wrapper: halves HBM traffic and resident VMEM for the weight.
        w_flat = w_flat.astype(matmul_dtype)
    # NOTE: zero centroids_num yields NaN/Inf, exactly like the PyTorch module.
    centroids = (centroids_sum.astype(jnp.float32)
                 / centroids_num.astype(jnp.float32)[None, :])            # (M, N)
    c_flat = jnp.pad(centroids, ((0, 0), (0, N_pad - N))).reshape(1, M * N_pad)
    return w_flat, c_flat, (M, N, N_pad, D)


def duq_apply(x, w_flat, c_flat, dims, length_scale, *,
              matmul_dtype=None, block_b=256, block_k=None):
    """Run the DUQ forward kernel on prepared parameters."""
    M, N, N_pad, D = dims
    MN = M * N_pad
    B = x.shape[0]
    assert x.shape[1] == D, "feature_dim mismatch between x and weight"

    if matmul_dtype is not None and x.dtype != matmul_dtype:
        x = x.astype(matmul_dtype)          # wrapper-side cast: halves x DMA bytes
    if matmul_dtype is not None and w_flat.dtype != matmul_dtype:
        w_flat = w_flat.astype(matmul_dtype)

    x_item = jnp.dtype(x.dtype).itemsize
    w_item = jnp.dtype(w_flat.dtype).itemsize

    # ---- batch tiling: always tiled; pad B up to a tile multiple -----------
    # TODO(synk): bump block_b to 512 on v6e (128 MiB VMEM) when shapes allow.
    TB = min(block_b, _round_up(B, 8))
    B_pad = _round_up(B, TB)
    if B_pad != B:
        x = jnp.pad(x, ((0, B_pad - B), (0, 0)))   # pad rows sliced off below
    nb = B_pad // TB

    # ---- K (feature) tiling for large resident weights (v7x: 64 MiB VMEM) --
    if block_k is None and D * MN * w_item > (16 << 20):
        for cand in (512, 256, 128):
            if D % cand == 0:
                block_k = cand
                break
    use_ktile = block_k is not None and 0 < block_k < D and D % block_k == 0

    scale = 1.0 / (float(M) * 2.0 * float(length_scale) ** 2)
    out_shape = (jax.ShapeDtypeStruct((B_pad, N_pad), jnp.float32),
                 jax.ShapeDtypeStruct((B_pad, N_pad), jnp.float32))

    if use_ktile:
        TK = block_k
        grid = (nb, D // TK)
        kernel = functools.partial(_duq_kernel_ktiled, M=M, N_pad=N_pad, scale=scale)
        in_specs = [
            pl.BlockSpec((TB, TK), lambda b, k: (b, k)),
            pl.BlockSpec((TK, MN), lambda b, k: (k, 0)),
            _const_spec((1, MN), lambda b, k: (0, 0), MN * 4),
        ]
        out_specs = (pl.BlockSpec((TB, N_pad), lambda b, k: (b, 0)),
                     pl.BlockSpec((TB, N_pad), lambda b, k: (b, 0)))
        scratch_shapes = [pltpu.VMEM((TB, MN), jnp.float32)]
        dim_sem = ("parallel", "arbitrary")
        vmem_est = (2 * TB * TK * x_item + 2 * TK * MN * w_item + 2 * MN * 4
                    + 2 * 2 * TB * N_pad * 4 + TB * MN * 4)
    else:
        grid = (nb,)
        kernel = functools.partial(_duq_kernel, M=M, N_pad=N_pad, scale=scale)
        in_specs = [
            pl.BlockSpec((TB, D), lambda b: (b, 0)),
            _const_spec((D, MN), lambda b: (0, 0), D * MN * w_item),
            _const_spec((1, MN), lambda b: (0, 0), MN * 4),
        ]
        out_specs = (pl.BlockSpec((TB, N_pad), lambda b: (b, 0)),
                     pl.BlockSpec((TB, N_pad), lambda b: (b, 0)))
        scratch_shapes = []
        # TODO(synk): on v7x verify both TensorCores are active; if not, switch
        # the batch axis to pltpu.CORE_PARALLEL / an explicit core_map split.
        dim_sem = ("parallel",)
        vmem_est = (2 * TB * D * x_item + 2 * D * MN * w_item + 2 * MN * 4
                    + 2 * 2 * TB * N_pad * 4)

    vmem_limit = int(min(max(2 * vmem_est + (4 << 20), 16 << 20), 128 << 20))

    cost = pl.CostEstimate(
        flops=int(2 * B_pad * D * MN),
        transcendentals=int(2 * B_pad * N_pad),           # exp + log per output elem
        bytes_accessed=int(B_pad * D * x_item + D * MN * w_item
                           + MN * 4 + 2 * B_pad * N_pad * 4))

    conf_pad, logc_pad = pl.pallas_call(
        kernel,
        out_shape=out_shape,
        grid=grid,
        in_specs=in_specs,
        out_specs=out_specs,
        scratch_shapes=scratch_shapes,
        compiler_params=pltpu.CompilerParams(
            dimension_semantics=dim_sem,
            vmem_limit_bytes=vmem_limit),
        cost_estimate=cost,
    )(x, w_flat, c_flat)

    conf = conf_pad[:B, :N]
    log_conf = logc_pad[:B, :N]
    return {"confidences": conf, "log_confidences": log_conf, "logits": log_conf}


def duq_forward(x, weight, centroids_sum, centroids_num, length_scale, *,
                matmul_dtype=None, block_b=256, block_k=None):
    """Pallas implementation of DUQClassifier.forward (prepare + apply)."""
    w_flat, c_flat, dims = prepare_duq_params(
        weight, centroids_sum, centroids_num, matmul_dtype=matmul_dtype)
    return duq_apply(x, w_flat, c_flat, dims, length_scale,
                     matmul_dtype=matmul_dtype, block_b=block_b, block_k=block_k)


def _reference(x, weight, centroids_sum, centroids_num, length_scale):
    z = jnp.einsum("ij,mnj->imn", x, weight,
                   precision=jax.lax.Precision.HIGHEST)        # (B, M, N)
    centroids = centroids_sum / centroids_num[None, :]          # (M, N)
    sq = jnp.mean((z - centroids[None]) ** 2, axis=1)           # (B, N)
    conf = jnp.exp(-sq / (2.0 * float(length_scale) ** 2))
    return conf, jnp.log(conf)


if __name__ == "__main__":
    key = jax.random.PRNGKey(0)
    kx, kw, ks, kx2, kw2 = jax.random.split(key, 5)

    length_scale = 0.1
    M, N = 8, 16           # centroid_dim, num_classes

    # Module inits params/buffers to zeros, which would NaN the centroid
    # division (same as PyTorch); use nonzero deterministic values instead.
    centroids_sum = 0.1 * jax.random.normal(ks, (M, N), dtype=jnp.float32)
    centroids_num = jnp.full((N,), 4.0, dtype=jnp.float32)

    # Case 1: small shapes, full-D resident-weight path, f32.
    B, D = 8, 32
    x = jax.random.normal(kx, (B, D), dtype=jnp.float32)
    weight = 0.05 * jax.random.normal(kw, (M, N, D), dtype=jnp.float32)

    out = duq_forward(x, weight, centroids_sum, centroids_num, length_scale)
    jax.block_until_ready(out)
    ref_conf, ref_log = _reference(x, weight, centroids_sum, centroids_num, length_scale)
    assert jnp.allclose(out["confidences"], ref_conf, atol=1e-5, rtol=1e-3), "conf mismatch"
    assert jnp.allclose(out["log_confidences"], ref_log, atol=1e-4, rtol=1e-3), "log_conf mismatch"
    assert out["logits"] is out["log_confidences"]

    # Case 2: K-tiled path (feature_dim split on a reduction grid axis) and a
    # batch that is not a multiple of the tile (exercises wrapper padding).
    B2, D2 = 12, 256
    x2 = jax.random.normal(kx2, (B2, D2), dtype=jnp.float32)
    weight2 = 0.02 * jax.random.normal(kw2, (M, N, D2), dtype=jnp.float32)
    out2 = duq_forward(x2, weight2, centroids_sum, centroids_num, length_scale,
                       block_k=128)
    jax.block_until_ready(out2)
    ref_conf2, ref_log2 = _reference(x2, weight2, centroids_sum, centroids_num, length_scale)
    assert jnp.allclose(out2["confidences"], ref_conf2, atol=1e-5, rtol=1e-3), "conf mismatch (ktiled)"
    assert jnp.allclose(out2["log_confidences"], ref_log2, atol=1e-4, rtol=1e-3), "log_conf mismatch (ktiled)"

    # Case 3: bf16 matmul inputs (cast in the wrapper), f32 accumulation;
    # loose tolerance since z is formed from bf16 inputs.
    out3 = duq_forward(x, weight, centroids_sum, centroids_num, length_scale,
                       matmul_dtype=jnp.bfloat16)
    jax.block_until_ready(out3)
    assert jnp.allclose(out3["log_confidences"], ref_log, atol=0.2, rtol=0.15), "bf16 log_conf mismatch"

    print("KERNEL_OK")
</pallas_src>

<mosaic_0001>
module attributes {stable_mosaic.version = 11 : i64} {
  func.func @_duq_kernel(%arg0: i32, %arg1: memref<8x32xf32, #tpu.memory_space<vmem>>, %arg2: memref<32x1024xf32, #tpu.memory_space<vmem>>, %arg3: memref<1x1024xf32, #tpu.memory_space<vmem>>, %arg4: memref<8x128xf32, #tpu.memory_space<vmem>>, %arg5: memref<8x128xf32, #tpu.memory_space<vmem>>) attributes {dimension_semantics = [#tpu.dimension_semantics<parallel>], iteration_bounds = array<i64: 1>, scalar_prefetch = 0 : i64, scratch_operands = 0 : i64, tpu.core_type = #tpu.core_type<tc>, window_params = [{transform_indices = @transform_0, window_bounds = array<i64: 8, 32>}, {pipeline_mode = #tpu.pipeline_mode<synchronous>, transform_indices = @transform_1, window_bounds = array<i64: 32, 1024>}, {pipeline_mode = #tpu.pipeline_mode<synchronous>, transform_indices = @transform_2, window_bounds = array<i64: 1, 1024>}, {transform_indices = @transform_3, window_bounds = array<i64: 8, 128>}, {transform_indices = @transform_4, window_bounds = array<i64: 8, 128>}]} {
    %c0 = arith.constant 0 : index
    %c0_0 = arith.constant 0 : index
    %0 = vector.load %arg1[%c0, %c0_0] : memref<8x32xf32, #tpu.memory_space<vmem>>, vector<8x32xf32>
    %c0_1 = arith.constant 0 : index
    %c0_2 = arith.constant 0 : index
    %1 = vector.load %arg2[%c0_1, %c0_2] : memref<32x1024xf32, #tpu.memory_space<vmem>>, vector<32x1024xf32>
    %cst = arith.constant dense<0.000000e+00> : vector<8x1024xf32>
    %2 = tpu.matmul %0, %1, %cst {dimension_numbers = #tpu.dot_dimension_numbers<[1], [0], [0], [1], [0, 0, 1, 1], [], []>} : vector<8x32xf32>, vector<32x1024xf32>, vector<8x1024xf32> -> vector<8x1024xf32>
    %c0_3 = arith.constant 0 : index
    %c0_4 = arith.constant 0 : index
    %3 = vector.load %arg3[%c0_3, %c0_4] : memref<1x1024xf32, #tpu.memory_space<vmem>>, vector<1x1024xf32>
    %4 = vector.broadcast %3 : vector<1x1024xf32> to vector<8x1024xf32>
    %5 = arith.subf %2, %4 : vector<8x1024xf32>
    %6 = arith.mulf %5, %5 : vector<8x1024xf32>
    %7 = vector.extract_strided_slice %6 {offsets = [0, 0], sizes = [8, 128], strides = [1, 1]} : vector<8x1024xf32> to vector<8x128xf32>
    %8 = vector.extract_strided_slice %6 {offsets = [0, 128], sizes = [8, 128], strides = [1, 1]} : vector<8x1024xf32> to vector<8x128xf32>
    %9 = arith.addf %7, %8 : vector<8x128xf32>
    %10 = vector.extract_strided_slice %6 {offsets = [0, 256], sizes = [8, 128], strides = [1, 1]} : vector<8x1024xf32> to vector<8x128xf32>
    %11 = arith.addf %9, %10 : vector<8x128xf32>
    %12 = vector.extract_strided_slice %6 {offsets = [0, 384], sizes = [8, 128], strides = [1, 1]} : vector<8x1024xf32> to vector<8x128xf32>
    %13 = arith.addf %11, %12 : vector<8x128xf32>
    %14 = vector.extract_strided_slice %6 {offsets = [0, 512], sizes = [8, 128], strides = [1, 1]} : vector<8x1024xf32> to vector<8x128xf32>
    %15 = arith.addf %13, %14 : vector<8x128xf32>
    %16 = vector.extract_strided_slice %6 {offsets = [0, 640], sizes = [8, 128], strides = [1, 1]} : vector<8x1024xf32> to vector<8x128xf32>
    %17 = arith.addf %15, %16 : vector<8x128xf32>
    %18 = vector.extract_strided_slice %6 {offsets = [0, 768], sizes = [8, 128], strides = [1, 1]} : vector<8x1024xf32> to vector<8x128xf32>
    %19 = arith.addf %17, %18 : vector<8x128xf32>
    %20 = vector.extract_strided_slice %6 {offsets = [0, 896], sizes = [8, 128], strides = [1, 1]} : vector<8x1024xf32> to vector<8x128xf32>
    %21 = arith.addf %19, %20 : vector<8x128xf32>
    %cst_5 = arith.constant 6.250000e+00 : f32
    %22 = vector.broadcast %cst_5 : f32 to vector<8x128xf32>
    %23 = arith.mulf %21, %22 : vector<8x128xf32>
    %cst_6 = arith.constant 0.000000e+00 : f32
    %24 = vector.broadcast %cst_6 : f32 to vector<8x128xf32>
    %25 = arith.subf %24, %23 : vector<8x128xf32>
    %26 = math.exp %25 : vector<8x128xf32>
    %27 = math.log %26 : vector<8x128xf32>
    %c0_7 = arith.constant 0 : index
    %c0_8 = arith.constant 0 : index
    %28 = vector.load %arg4[%c0_7, %c0_8] : memref<8x128xf32, #tpu.memory_space<vmem>>, vector<8x128xf32>
    tpu.vector_store %arg4[%c0_7, %c0_8], %26 {strides = array<i32>} : memref<8x128xf32, #tpu.memory_space<vmem>>, vector<8x128xf32>,
    %c0_9 = arith.constant 0 : index
    %c0_10 = arith.constant 0 : index
    %29 = vector.load %arg5[%c0_9, %c0_10] : memref<8x128xf32, #tpu.memory_space<vmem>>, vector<8x128xf32>
    tpu.vector_store %arg5[%c0_9, %c0_10], %27 {strides = array<i32>} : memref<8x128xf32, #tpu.memory_space<vmem>>, vector<8x128xf32>,
    return
  }
  func.func @transform_0(%arg0: i32) -> (i32, i32) {
    %c0_i32 = arith.constant 0 : i32
    %c0_i32_0 = arith.constant 0 : i32
    return %arg0, %c0_i32 : i32, i32
  }
  func.func @transform_1(%arg0: i32) -> (i32, i32) {
    %c0_i32 = arith.constant 0 : i32
    %c0_i32_0 = arith.constant 0 : i32
    %c0_i32_1 = arith.constant 0 : i32
    return %c0_i32, %c0_i32_0 : i32, i32
  }
  func.func @transform_2(%arg0: i32) -> (i32, i32) {
    %c0_i32 = arith.constant 0 : i32
    %c0_i32_0 = arith.constant 0 : i32
    %c0_i32_1 = arith.constant 0 : i32
    return %c0_i32, %c0_i32_0 : i32, i32
  }
  func.func @transform_3(%arg0: i32) -> (i32, i32) {
    %c0_i32 = arith.constant 0 : i32
    %c0_i32_0 = arith.constant 0 : i32
    return %arg0, %c0_i32 : i32, i32
  }
  func.func @transform_4(%arg0: i32) -> (i32, i32) {
    %c0_i32 = arith.constant 0 : i32
    %c0_i32_0 = arith.constant 0 : i32
    return %arg0, %c0_i32 : i32, i32
  }
}

</mosaic_0001>

<bundles_post_ra>
// kernel: tpu_custom_call.1
= control target key start
LH: loop header
LB: loop body
LE: loop exit
PB: predicated region body
PF: predicated region fallthrough
CT: control target
= control target key end

     0   :  { %10 = vsyncpa [#allocation3], 0  ;;  %s543_s0 = inlined_call_operand.hbm [shape: f32[8,32], index: 0, kind: input, shape index: {}]   ;;  %s544_s1 = inlined_call_operand.hbm [shape: f32[32,1024], index: 1, kind: input, shape index: {}]   ;;  %s545_s2 = inlined_call_operand.hbm [shape: f32[1,1024], index: 2, kind: input, shape index: {}]   ;;  %s546_s3 = inlined_call_operand.hbm [shape: f32[8,128], index: 3, kind: output, shape index: {0}]   ;;  %s547_s4 = inlined_call_operand.hbm [shape: f32[8,128], index: 4, kind: output, shape index: {1}]  }
   0x1   :  { %11 = vsyncpa [#allocation6], 0 }
   0x2   :  { %12 = vsyncpa [#allocation4], 0  ;;  %s29_s17 = sshll.u32 %s544_s1, 4  ;;  %s30_s17 = int_to_ptr.hbm [resolvable:$true] %s29_s17 }
   0x3   :  { %13 = vsyncpa [#allocation10], 0  ;;  %s488_s18 = smov [#allocation5]   ;;  %s19_s22 = sshll.u32 %s543_s0, 4  ;;  %s20_s22 = int_to_ptr.hbm [resolvable:$true] %s19_s22 }
   0x4   :  { %s31_s19 = sshll.u32 %s488_s18, 4  ;;  %s489_s23 = smov 1024   ;;  %s32_s19 = int_to_ptr.vmem [resolvable:$true] %s31_s19 }
   0x5   :  { %s490_s24 = smov 64   ;;  %s491_s25 = smov [#allocation2]  }
   0x6   :  { %37 = dma.hbm_to_vmem [thread:$0]  %s30_s17, 4096, %s32_s19, [#allocation6], %s489_s23, %s489_s23, %s490_s24  }
   0x7   :  { %s21_s26 = sshll.u32 %s491_s25, 4  ;;  %s43_s29 = sshll.u32 %s545_s2, 4  ;;  %s22_s26 = int_to_ptr.vmem [resolvable:$true] %s21_s26  ;;  %s44_s29 = int_to_ptr.hbm [resolvable:$true] %s43_s29 }
   0x8   :  { %24 = dma.hbm_to_vmem [thread:$0]  %s20_s22, 128, %s22_s26, [#allocation3]  }
   0x9   :  { %s492_s1 = smov [#allocation7]  }
   0xa   :  { %s45_s30 = sshll.u32 %s492_s1, 4  ;;  %s46_s30 = int_to_ptr.vmem [resolvable:$true] %s45_s30 }
   0xb   :  { %48 = dma.hbm_to_vmem [thread:$0]  %s44_s29, 128, %s46_s30, [#allocation6]  }
   0xc   :  { %480 = dma.done.wait [#allocation3], 128  }
   0xd   :  { %481 = vsyncadd [#allocation3], 4294967168 }
   0xe   :  { %482 = dma.done.wait [#allocation6], 4224  }
   0xf   :  { %483 = vsyncadd [#allocation6], 4294963072  ;;  %v88_v0 = vld [vmem:[#allocation5 + $0xd0] sm:$0xff]  ;;  %v86_v1 = vld [vmem:[#allocation5 + $0xc0] sm:$0xff]  ;;  %vm94_vm0 = vcmask 261120   ;;  %s493_s0 = smov [#allocation8]  }
  0x10   :  { %v87_v2 = vld [vmem:[#allocation5 + $0xc8] sm:$0xff]  ;;  %150 = vmatpush.msra.mxu2 %v88_v0  ;;  %110 = vmatpush.msra.mxu0 %v86_v1  ;;  %v80_v3 = vld [vmem:[#allocation5 + $0x90] sm:$0xff]  ;;  %v89_v4 = vld [vmem:[#allocation5 + $0xd8] sm:$0xff]  ;;  %s312_s2 = sshll.u32 %s493_s0, 4  ;;  %s314_s7 = sshll.u32 %s546_s3, 4  ;;  %s313_s2 = int_to_ptr.vmem [resolvable:$true] %s312_s2  ;;  %s315_s7 = int_to_ptr.hbm [resolvable:$true] %s314_s7 }
  0x11   :  { %v78_v5 = vld [vmem:[#allocation5 + $0x80] sm:$0xff]  ;;  %130 = vmatpush.msra.mxu1 %v87_v2  ;;  %170 = vmatpush.msra.mxu3 %v89_v4  ;;  %v79_v6 = vld [vmem:[#allocation5 + $0x88] sm:$0xff]  ;;  %v72_v7 = vld [vmem:[#allocation5 + $0x50] sm:$0xff]  ;;  %s494_s8 = smov [#allocation9]   ;;  %s325_s12 = sshll.u32 %s547_s4, 4  ;;  %s326_s12 = int_to_ptr.hbm [resolvable:$true] %s325_s12 }
  0x12   :  { %v81_v8 = vld [vmem:[#allocation5 + $0x98] sm:$0xff]  ;;  %151 = vmatpush.msra.mxu2 %v80_v3  ;;  %111 = vmatpush.msra.mxu0 %v78_v5  ;;  %v70_v9 = vld [vmem:[#allocation5 + $0x40] sm:$0xff]  ;;  %v71_v10 = vld [vmem:[#allocation5 + $0x48] sm:$0xff]  ;;  %s323_s9 = sshll.u32 %s494_s8, 4  ;;  %s324_s9 = int_to_ptr.vmem [resolvable:$true] %s323_s9 }
  0x13   :  { %131 = vmatpush.msra.mxu1 %v79_v6  ;;  %171 = vmatpush.msra.mxu3 %v81_v8  ;;  %v64_v11 = vld [vmem:[#allocation5 + $0x10] sm:$0xff]  ;;  %v73_v12 = vld [vmem:[#allocation5 + $0x58] sm:$0xff]  ;;  %v62_v14 = vld [vmem:[#allocation5] sm:$0xff] }
  0x14   :  { %152 = vmatpush.msra.mxu2 %v72_v7  ;;  %112 = vmatpush.msra.mxu0 %v70_v9  ;;  %v61_v13 = vld [vmem:[#allocation2] sm:$0xff]  ;;  %v63_v15 = vld [vmem:[#allocation5 + $0x8] sm:$0xff]  ;;  %v92_v16 = vld [vmem:[#allocation5 + $0xf0] sm:$0xff] }
  0x15   :  { %132 = vmatpush.msra.mxu1 %v71_v10  ;;  %172 = vmatpush.msra.mxu3 %v73_v12  ;;  %v65_v17 = vld [vmem:[#allocation5 + $0x18] sm:$0xff]  ;;  %v90_v18 = vld [vmem:[#allocation5 + $0xe0] sm:$0xff]  ;;  %v84_v19 = vld [vmem:[#allocation5 + $0xb0] sm:$0xff] }
  0x16   :  { %153 = vmatpush.msra.mxu2 %v64_v11  ;;  %113 = vmatpush.msra.mxu0 %v62_v14  ;;  %v93_v20 = vld [vmem:[#allocation5 + $0xf8] sm:$0xff]  ;;  %v82_v21 = vld [vmem:[#allocation5 + $0xa0] sm:$0xff]  ;;  %v91_v22 = vld [vmem:[#allocation5 + $0xe8] sm:$0xff] }
  0x17   :  { %343 = vmatmul.msk.f32.vlgmr.msra.gmra.mxu2 %vm94_vm0, %v61_v13  ;;  %133 = vmatpush.msra.mxu1 %v63_v15  ;;  %v76_v23 = vld [vmem:[#allocation5 + $0x70] sm:$0xff]  ;;  %v85_v24 = vld [vmem:[#allocation5 + $0xb8] sm:$0xff]  ;;  %v74_v25 = vld [vmem:[#allocation5 + $0x60] sm:$0xff] }
  0x18   :  { %230 = vmatpush.msrb.mxu2 %v92_v16  ;;  %173 = vmatpush.msra.mxu3 %v65_v17  ;;  %v83_v26 = vld [vmem:[#allocation5 + $0xa8] sm:$0xff]  ;;  %v68_v27 = vld [vmem:[#allocation5 + $0x30] sm:$0xff]  ;;  %v77_v28 = vld [vmem:[#allocation5 + $0x78] sm:$0xff] }
  0x19   :  { %341 = vmatmul.msk.f32.vlgmr.msra.gmra.mxu0 %vm94_vm0, %v61_v13  ;;  %342 = vmatmul.msk.f32.vlgmr.msra.gmra.mxu1 %vm94_vm0, %v61_v13  ;;  %v66_v29 = vld [vmem:[#allocation5 + $0x20] sm:$0xff]  ;;  %v75_v30 = vld [vmem:[#allocation5 + $0x68] sm:$0xff]  ;;  %v69_v31 = vld [vmem:[#allocation5 + $0x38] sm:$0xff] }
  0x1a   :  { %344 = vmatmul.msk.f32.vlgmr.msra.gmra.mxu3 %vm94_vm0, %v61_v13  ;;  %190 = vmatpush.msrb.mxu0 %v90_v18  ;;  %v67_v32 = vld [vmem:[#allocation5 + $0x28] sm:$0xff]  ;;  %v258_v33 = vld [vmem:[#allocation7] sm:$0xff] }
  0x1b   :  { %231 = vmatpush.msrb.mxu2 %v84_v19  ;;  %250 = vmatpush.msrb.mxu3 %v93_v20  ;;  %v260_v34 = vperm.slane %v258_v33, 0  ;;  %v261_v35 = vperm.slane %v258_v33, 1  ;;  %v262_v40 = vperm.slane %v258_v33, 2  ;;  %v263_v44 = vperm.slane %v258_v33, 3 }
  0x1c   :  { %191 = vmatpush.msrb.mxu0 %v82_v21  ;;  %210 = vmatpush.msrb.mxu1 %v91_v22  ;;  %v264_v46 = vperm.slane %v258_v33, 4  ;;  %v265_v50 = vperm.slane %v258_v33, 5  ;;  %v266_v58 = vperm.slane %v258_v33, 6  ;;  %v267_v62 = vperm.slane %v258_v33, 7 }
  0x1d   :  { %232 = vmatpush.msrb.mxu2 %v76_v23  ;;  %251 = vmatpush.msrb.mxu3 %v85_v24 }
  0x1e   :  { %192 = vmatpush.msrb.mxu0 %v74_v25  ;;  %211 = vmatpush.msrb.mxu1 %v83_v26 }
  0x1f   :  { %233 = vmatpush.msrb.mxu2 %v68_v27  ;;  %252 = vmatpush.msrb.mxu3 %v77_v28 }
  0x20   :  { %193 = vmatpush.msrb.mxu0 %v66_v29  ;;  %212 = vmatpush.msrb.mxu1 %v75_v30 }
  0x21   :  { %347 = vmatmul.msk.f32.vlgmr.msrb.gmra.mxu2 %vm94_vm0, %v61_v13  ;;  %253 = vmatpush.msrb.mxu3 %v69_v31 }
  0x22   :  { %345 = vmatmul.msk.f32.vlgmr.msrb.gmra.mxu0 %vm94_vm0, %v61_v13  ;;  %213 = vmatpush.msrb.mxu1 %v67_v32 }
  0x23   :  { %348 = vmatmul.msk.f32.vlgmr.msrb.gmra.mxu3 %vm94_vm0, %v61_v13  ;;  %346 = vmatmul.msk.f32.vlgmr.msrb.gmra.mxu1 %vm94_vm0, %v61_v13 }
  0x96   :  { %v115_v36 = vpop.f32.mrf.mxu0  ;;  %v135_v37 = vpop.f32.mrf.mxu1 }
  0x97   :  { %v276_v38 = vsub.f32 %v115_v36, %v260_v34  ;;  %v277_v39 = vsub.f32 %v135_v37, %v261_v35 }
  0x99   :  { %v284_v41 = vmul.f32 %v276_v38, %v276_v38  ;;  %v285_v42 = vmul.f32 %v277_v39, %v277_v39 }
  0x9a   :  { %v155_v43 = vpop.f32.mrf.mxu2 }
  0x9b   :  { %v278_v45 = vsub.f32 %v155_v43, %v262_v40  ;;  %v292_v47 = vadd.f32 %v285_v42, %v284_v41 }
  0x9d   :  { %v286_v48 = vmul.f32 %v278_v45, %v278_v45  ;;  %v175_v49 = vpop.f32.mrf.mxu3 }
  0x9e   :  { %v279_v51 = vsub.f32 %v175_v49, %v263_v44 }
  0x9f   :  { %v293_v52 = vadd.f32 %v292_v47, %v286_v48  ;;  %v195_v53 = vpop.f32.mrf.mxu0 }
  0xa0   :  { %v287_v54 = vmul.f32 %v279_v51, %v279_v51  ;;  %v280_v55 = vsub.f32 %v195_v53, %v264_v46  ;;  %v215_v56 = vpop.f32.mrf.mxu1 }
  0xa1   :  { %v281_v57 = vsub.f32 %v215_v56, %v265_v50 }
  0xa2   :  { %v294_v59 = vadd.f32 %v293_v52, %v287_v54  ;;  %v288_v60 = vmul.f32 %v280_v55, %v280_v55 }
  0xa3   :  { %v289_v61 = vmul.f32 %v281_v57, %v281_v57 }
  0xa4   :  { %v295_v63 = vadd.f32 %v294_v59, %v288_v60  ;;  %v235_v0 = vpop.f32.mrf.mxu2 }
  0xa5   :  { %v282_v1 = vsub.f32 %v235_v0, %v266_v58 }
  0xa6   :  { %v296_v2 = vadd.f32 %v295_v63, %v289_v61  ;;  %v255_v3 = vpop.f32.mrf.mxu3 }
  0xa7   :  { %v290_v4 = vmul.f32 %v282_v1, %v282_v1  ;;  %v283_v5 = vsub.f32 %v255_v3, %v267_v62 }
  0xa9   :  { %v297_v6 = vadd.f32 %v296_v2, %v290_v4  ;;  %v291_v7 = vmul.f32 %v283_v5, %v283_v5 }
  0xab   :  { %v298_v8 = vadd.f32 %v297_v6, %v291_v7 }
  0xad   :  { %v299_v9 = vmul.f32 6.25, %v298_v8 }
  0xaf   :  { %v300_v10 = vsub.f32 0.0, %v299_v9 }
  0xb1   :  { %v301_v11 = vmul.f32 1.442695, %v300_v10 }
  0xb3   :  { %356 = vpow2.f32 %v301_v11 }
  0xb9   :  { %v357_v12 = vpop.eup %356 }
  0xba   :  { %305 = vst [vmem:[#allocation8] sm:$0xff] %v357_v12  ;;  %358 = vlog2.f32 %v357_v12 }
  0xbb   :  { %317 = dma.vmem_to_hbm [thread:$0]  %s313_s2, 128, %s315_s7, [#allocation4]  }
  0xc0   :  { %v359_v13 = vpop.eup %358 }
  0xc1   :  { %v304_v14 = vmul.f32 0.6931472, %v359_v13 }
  0xc3   :  { %306 = vst [vmem:[#allocation9] sm:$0xff] %v304_v14 }
  0xc4   :  { %328 = dma.vmem_to_hbm [thread:$0]  %s324_s9, 128, %s326_s12, [#allocation10]  }
  0xc5   :  { %484 = dma.done.wait [#allocation4], 128  }
  0xc6   :  { %485 = vsyncadd [#allocation4], 4294967168 }
  0xc7   :  { %486 = dma.done.wait [#allocation10], 128  }
  0xc8   :  { %487 = vsyncadd [#allocation10], 4294967168 }
  0xc9   :  { %337 = vsyncpa [#allocation3], 1 }
  0xca   :  { %338 = vsyncpa [#allocation6], 1 }
  0xcb   :  { %339 = vsyncpa [#allocation4], 1 }
  0xcc   :  { %340 = vsyncpa [#allocation10], 1 }

</bundles_post_ra>
